<compile_context>
chip_gen: v6e
topology: v6e:2x2x1
jax: 0.10.0
libtpu: 0.0.40
codegen_flags: <defaults>
</compile_context>

<pallas_src>
import jax
import jax.numpy as jnp
from jax.experimental import pallas as pl
from jax.experimental.pallas import tpu as pltpu


def _make_kernel(n_conv, n_mlp):
    """Kernel body: chain of matmuls over a (features, B_TILE) batch slab."""

    def kernel(*refs):
        x_ref = refs[0]
        p = refs[1:-1]
        out_ref = refs[-1]

        h = x_ref[...].astype(jnp.float32)            # (F0, B_TILE), batch on lanes

        idx = 0
        # ---- fused Conv1d + ReLU + MaxPool1d(2) layers (even/odd pooling branches) ----
        for _ in range(n_conv):
            w_even = p[idx][...]                      # (C_out*L/2, C_in*L)
            w_odd = p[idx + 1][...]                   # (C_out*L/2, C_in*L)
            b = p[idx + 2][...]                       # (C_out*L/2, 1) -> lane broadcast
            idx += 3
            z_even = jnp.dot(w_even, h, preferred_element_type=jnp.float32)
            z_odd = jnp.dot(w_odd, h, preferred_element_type=jnp.float32)
            h = jnp.maximum(jnp.maximum(z_even, z_odd) + b, 0.0)

        # ---- MLP: Linear (+ ReLU on hidden layers); Dropout == identity at inference ----
        for i in range(n_mlp):
            w = p[idx][...]                           # (out, in)  (native PyTorch layout)
            b = p[idx + 1][...]                       # (out, 1)
            idx += 2
            h = jnp.dot(w, h, preferred_element_type=jnp.float32) + b
            if i < n_mlp - 1:
                h = jnp.maximum(h, 0.0)

        out_ref[...] = h.astype(out_ref.dtype)        # (output_dim, B_TILE), lane-dense store

    return kernel


def _fuse_conv_pool(W, bvec, L):
    """Fuse Conv1d(padding=K//2) + ReLU + MaxPool1d(2) into dense even/odd operators.

    Returns (W_even, W_odd, b_pool), channel-major row layout (row = c*L' + l), such that
        relu(max(W_even @ h, W_odd @ h) + b_pool)  ==  maxpool2(relu(conv1d(h) + bias)).
    """
    C_out, C_in, K = W.shape
    pad = K // 2
    # Dense Toeplitz form of the conv: M[o*L + l, i*L + m] = W[o, i, k] where m = l + k - pad.
    shifts = jnp.stack(
        [jnp.eye(L, k=k - pad, dtype=jnp.float32) for k in range(K)])       # (K, L, L)
    M = jnp.einsum('oik,klm->olim', W.astype(jnp.float32), shifts)          # (Co, L, Ci, L)
    M = M.reshape(C_out * L, C_in * L)
    # Even / odd row selectors implement MaxPool1d(2); selection commutes with ReLU & bias.
    Lh = L // 2
    eye_l = jnp.eye(L, dtype=jnp.float32)
    sel_e = jnp.kron(jnp.eye(C_out, dtype=jnp.float32), eye_l[0::2])        # (Co*Lh, Co*L)
    sel_o = jnp.kron(jnp.eye(C_out, dtype=jnp.float32), eye_l[1::2])
    w_even = sel_e @ M                                                      # (Co*Lh, Ci*L)
    w_odd = sel_o @ M
    b_pool = jnp.repeat(bvec.astype(jnp.float32), Lh)[:, None]              # (Co*Lh, 1)
    return w_even, w_odd, b_pool


def conv_mlp_regressor(x, params_pt, conv_dims, mlp_dims, output_dim,
                       kernel_size=3, b_tile=256):
    """Repack PyTorch-format params and launch the batch-tiled Pallas kernel."""
    conv_w_pt, conv_b_pt, mlp_w_pt, mlp_b_pt = params_pt
    B, input_dim = x.shape
    n_conv = len(conv_dims)
    assert kernel_size % 2 == 1, "even kernel_size changes PyTorch conv output length"
    assert input_dim % (2 ** n_conv) == 0, "length must stay even through every MaxPool1d(2)"

    kernel_args = []
    in_specs = []

    # fused conv(+relu+pool) operators
    L = input_dim
    for W, bvec in zip(conv_w_pt, conv_b_pt):
        w_even, w_odd, b_pool = _fuse_conv_pool(W, bvec, L)
        kernel_args += [w_even, w_odd, b_pool]
        in_specs += [pl.BlockSpec(w_even.shape, lambda i: (0, 0)),
                     pl.BlockSpec(w_odd.shape, lambda i: (0, 0)),
                     pl.BlockSpec(b_pool.shape, lambda i: (0, 0))]
        L //= 2

    # MLP layers: PyTorch (out, in) weights used directly (channel-major rows == torch flatten)
    for W, bvec in zip(mlp_w_pt, mlp_b_pt):
        wk = W.astype(jnp.float32)
        bk = bvec.astype(jnp.float32)[:, None]
        kernel_args += [wk, bk]
        in_specs += [pl.BlockSpec(wk.shape, lambda i: (0, 0)),
                     pl.BlockSpec(bk.shape, lambda i: (0, 0))]

    # batch-tiled, lane-dense activation slab: features on sublanes, batch on lanes
    n_tiles = pl.cdiv(B, b_tile)
    b_pad = n_tiles * b_tile
    x_t = jnp.zeros((input_dim, b_pad), jnp.float32).at[:, :B].set(
        x.astype(jnp.float32).T)

    kernel_args = [x_t] + kernel_args
    in_specs = [pl.BlockSpec((input_dim, b_tile), lambda i: (0, i))] + in_specs

    out = pl.pallas_call(
        _make_kernel(n_conv, len(mlp_w_pt)),
        out_shape=jax.ShapeDtypeStruct((output_dim, b_pad), jnp.float32),
        grid_spec=pltpu.PrefetchScalarGridSpec(
            num_scalar_prefetch=0,
            grid=(n_tiles,),
            in_specs=in_specs,
            out_specs=pl.BlockSpec((output_dim, b_tile), lambda i: (0, i)),
        ),
        compiler_params=pltpu.CompilerParams(
            dimension_semantics=("parallel",)),   # batch tiles shard across TCs on v7x
    )(*kernel_args)

    return out[:, :B].T                            # back to (B, output_dim)


def reference_forward(x, params_pt):
    """Pure-JAX reference with PyTorch NCL semantics (eval mode)."""
    conv_w, conv_b, mlp_w, mlp_b = params_pt
    B = x.shape[0]
    h = x[:, None, :]                                      # (B, 1, L)
    for W, bvec in zip(conv_w, conv_b):
        K = W.shape[2]
        pad = K // 2
        L = h.shape[2]
        hp = jnp.pad(h, ((0, 0), (0, 0), (pad, pad)))
        y = bvec[None, :, None]
        for k in range(K):
            y = y + jnp.einsum('bcl,oc->bol', hp[:, :, k:k + L], W[:, :, k],
                               preferred_element_type=jnp.float32)
        y = jax.nn.relu(y)
        C = y.shape[1]
        h = y.reshape(B, C, L // 2, 2).max(axis=-1)        # MaxPool1d(2)
    h = h.reshape(B, -1)                                   # channel-major flatten
    for i, (W, bvec) in enumerate(zip(mlp_w, mlp_b)):
        h = h @ W.T + bvec
        if i < len(mlp_w) - 1:
            h = jax.nn.relu(h)
    return h


if __name__ == "__main__":
    input_dim = 16
    conv_dims = [4, 8]
    mlp_dims = [32]
    output_dim = 8
    kernel_size = 3
    B = 2

    key = jax.random.PRNGKey(0)
    keys = jax.random.split(key, 16)
    x = jax.random.normal(keys[0], (B, input_dim), jnp.float32)

    # deterministic PyTorch-format parameters (synthetic, no checkpoint)
    conv_w, conv_b = [], []
    cin, ki = 1, 1
    for cout in conv_dims:
        conv_w.append(0.2 * jax.random.normal(keys[ki], (cout, cin, kernel_size), jnp.float32)); ki += 1
        conv_b.append(0.1 * jax.random.normal(keys[ki], (cout,), jnp.float32)); ki += 1
        cin = cout
    conv_out_dim = input_dim // 2 ** len(conv_dims) * conv_dims[-1]
    mlp_w, mlp_b = [], []
    fin = conv_out_dim
    for hdim in mlp_dims + [output_dim]:
        mlp_w.append(0.2 * jax.random.normal(keys[ki], (hdim, fin), jnp.float32)); ki += 1
        mlp_b.append(0.1 * jax.random.normal(keys[ki], (hdim,), jnp.float32)); ki += 1
        fin = hdim
    params = (conv_w, conv_b, mlp_w, mlp_b)

    out = conv_mlp_regressor(x, params, conv_dims, mlp_dims, output_dim, kernel_size)
    out = jax.block_until_ready(out)

    ref = reference_forward(x, params)
    assert out.shape == (B, output_dim), out.shape
    assert jnp.allclose(out, ref, atol=1e-3, rtol=1e-3), (out, ref)
    print("KERNEL_OK")
</pallas_src>

<mosaic_0001>
module attributes {stable_mosaic.version = 11 : i64} {
  func.func @kernel(%arg0: i32, %arg1: memref<16x256xf32, #tpu.memory_space<vmem>>, %arg2: memref<32x16xf32, #tpu.memory_space<vmem>>, %arg3: memref<32x16xf32, #tpu.memory_space<vmem>>, %arg4: memref<32x1xf32, #tpu.memory_space<vmem>>, %arg5: memref<32x32xf32, #tpu.memory_space<vmem>>, %arg6: memref<32x32xf32, #tpu.memory_space<vmem>>, %arg7: memref<32x1xf32, #tpu.memory_space<vmem>>, %arg8: memref<32x32xf32, #tpu.memory_space<vmem>>, %arg9: memref<32x1xf32, #tpu.memory_space<vmem>>, %arg10: memref<8x32xf32, #tpu.memory_space<vmem>>, %arg11: memref<8x1xf32, #tpu.memory_space<vmem>>, %arg12: memref<8x256xf32, #tpu.memory_space<vmem>>) attributes {dimension_semantics = [#tpu.dimension_semantics<parallel>], iteration_bounds = array<i64: 1>, scalar_prefetch = 0 : i64, scratch_operands = 0 : i64, tpu.core_type = #tpu.core_type<tc>, window_params = [{transform_indices = @transform_0, window_bounds = array<i64: 16, 256>}, {pipeline_mode = #tpu.pipeline_mode<synchronous>, transform_indices = @transform_1, window_bounds = array<i64: 32, 16>}, {pipeline_mode = #tpu.pipeline_mode<synchronous>, transform_indices = @transform_2, window_bounds = array<i64: 32, 16>}, {pipeline_mode = #tpu.pipeline_mode<synchronous>, transform_indices = @transform_3, window_bounds = array<i64: 32, 1>}, {pipeline_mode = #tpu.pipeline_mode<synchronous>, transform_indices = @transform_4, window_bounds = array<i64: 32, 32>}, {pipeline_mode = #tpu.pipeline_mode<synchronous>, transform_indices = @transform_5, window_bounds = array<i64: 32, 32>}, {pipeline_mode = #tpu.pipeline_mode<synchronous>, transform_indices = @transform_6, window_bounds = array<i64: 32, 1>}, {pipeline_mode = #tpu.pipeline_mode<synchronous>, transform_indices = @transform_7, window_bounds = array<i64: 32, 32>}, {pipeline_mode = #tpu.pipeline_mode<synchronous>, transform_indices = @transform_8, window_bounds = array<i64: 32, 1>}, {pipeline_mode = #tpu.pipeline_mode<synchronous>, transform_indices = @transform_9, window_bounds = array<i64: 8, 32>}, {pipeline_mode = #tpu.pipeline_mode<synchronous>, transform_indices = @transform_10, window_bounds = array<i64: 8, 1>}, {transform_indices = @transform_11, window_bounds = array<i64: 8, 256>}]} {
    %c0 = arith.constant 0 : index
    %c0_0 = arith.constant 0 : index
    %0 = vector.load %arg1[%c0, %c0_0] : memref<16x256xf32, #tpu.memory_space<vmem>>, vector<16x256xf32>
    %c0_1 = arith.constant 0 : index
    %c0_2 = arith.constant 0 : index
    %1 = vector.load %arg2[%c0_1, %c0_2] : memref<32x16xf32, #tpu.memory_space<vmem>>, vector<32x16xf32>
    %c0_3 = arith.constant 0 : index
    %c0_4 = arith.constant 0 : index
    %2 = vector.load %arg3[%c0_3, %c0_4] : memref<32x16xf32, #tpu.memory_space<vmem>>, vector<32x16xf32>
    %c0_5 = arith.constant 0 : index
    %c0_6 = arith.constant 0 : index
    %3 = vector.load %arg4[%c0_5, %c0_6] : memref<32x1xf32, #tpu.memory_space<vmem>>, vector<32x1xf32>
    %cst = arith.constant dense<0.000000e+00> : vector<32x256xf32>
    %4 = tpu.matmul %1, %0, %cst {dimension_numbers = #tpu.dot_dimension_numbers<[1], [0], [0], [1], [0, 0, 1, 1], [], []>} : vector<32x16xf32>, vector<16x256xf32>, vector<32x256xf32> -> vector<32x256xf32>
    %cst_7 = arith.constant dense<0.000000e+00> : vector<32x256xf32>
    %5 = tpu.matmul %2, %0, %cst_7 {dimension_numbers = #tpu.dot_dimension_numbers<[1], [0], [0], [1], [0, 0, 1, 1], [], []>} : vector<32x16xf32>, vector<16x256xf32>, vector<32x256xf32> -> vector<32x256xf32>
    %6 = arith.maximumf %4, %5 : vector<32x256xf32>
    %7 = vector.broadcast %3 : vector<32x1xf32> to vector<32x256xf32>
    %8 = arith.addf %6, %7 : vector<32x256xf32>
    %cst_8 = arith.constant 0.000000e+00 : f32
    %9 = vector.broadcast %cst_8 : f32 to vector<32x256xf32>
    %10 = arith.maximumf %8, %9 : vector<32x256xf32>
    %c0_9 = arith.constant 0 : index
    %c0_10 = arith.constant 0 : index
    %11 = vector.load %arg5[%c0_9, %c0_10] : memref<32x32xf32, #tpu.memory_space<vmem>>, vector<32x32xf32>
    %c0_11 = arith.constant 0 : index
    %c0_12 = arith.constant 0 : index
    %12 = vector.load %arg6[%c0_11, %c0_12] : memref<32x32xf32, #tpu.memory_space<vmem>>, vector<32x32xf32>
    %c0_13 = arith.constant 0 : index
    %c0_14 = arith.constant 0 : index
    %13 = vector.load %arg7[%c0_13, %c0_14] : memref<32x1xf32, #tpu.memory_space<vmem>>, vector<32x1xf32>
    %cst_15 = arith.constant dense<0.000000e+00> : vector<32x256xf32>
    %14 = tpu.matmul %11, %10, %cst_15 {dimension_numbers = #tpu.dot_dimension_numbers<[1], [0], [0], [1], [0, 0, 1, 1], [], []>} : vector<32x32xf32>, vector<32x256xf32>, vector<32x256xf32> -> vector<32x256xf32>
    %cst_16 = arith.constant dense<0.000000e+00> : vector<32x256xf32>
    %15 = tpu.matmul %12, %10, %cst_16 {dimension_numbers = #tpu.dot_dimension_numbers<[1], [0], [0], [1], [0, 0, 1, 1], [], []>} : vector<32x32xf32>, vector<32x256xf32>, vector<32x256xf32> -> vector<32x256xf32>
    %16 = arith.maximumf %14, %15 : vector<32x256xf32>
    %17 = vector.broadcast %13 : vector<32x1xf32> to vector<32x256xf32>
    %18 = arith.addf %16, %17 : vector<32x256xf32>
    %cst_17 = arith.constant 0.000000e+00 : f32
    %19 = vector.broadcast %cst_17 : f32 to vector<32x256xf32>
    %20 = arith.maximumf %18, %19 : vector<32x256xf32>
    %c0_18 = arith.constant 0 : index
    %c0_19 = arith.constant 0 : index
    %21 = vector.load %arg8[%c0_18, %c0_19] : memref<32x32xf32, #tpu.memory_space<vmem>>, vector<32x32xf32>
    %c0_20 = arith.constant 0 : index
    %c0_21 = arith.constant 0 : index
    %22 = vector.load %arg9[%c0_20, %c0_21] : memref<32x1xf32, #tpu.memory_space<vmem>>, vector<32x1xf32>
    %cst_22 = arith.constant dense<0.000000e+00> : vector<32x256xf32>
    %23 = tpu.matmul %21, %20, %cst_22 {dimension_numbers = #tpu.dot_dimension_numbers<[1], [0], [0], [1], [0, 0, 1, 1], [], []>} : vector<32x32xf32>, vector<32x256xf32>, vector<32x256xf32> -> vector<32x256xf32>
    %24 = vector.broadcast %22 : vector<32x1xf32> to vector<32x256xf32>
    %25 = arith.addf %23, %24 : vector<32x256xf32>
    %cst_23 = arith.constant 0.000000e+00 : f32
    %26 = vector.broadcast %cst_23 : f32 to vector<32x256xf32>
    %27 = arith.maximumf %25, %26 : vector<32x256xf32>
    %c0_24 = arith.constant 0 : index
    %c0_25 = arith.constant 0 : index
    %28 = vector.load %arg10[%c0_24, %c0_25] : memref<8x32xf32, #tpu.memory_space<vmem>>, vector<8x32xf32>
    %c0_26 = arith.constant 0 : index
    %c0_27 = arith.constant 0 : index
    %29 = vector.load %arg11[%c0_26, %c0_27] : memref<8x1xf32, #tpu.memory_space<vmem>>, vector<8x1xf32>
    %cst_28 = arith.constant dense<0.000000e+00> : vector<8x256xf32>
    %30 = tpu.matmul %28, %27, %cst_28 {dimension_numbers = #tpu.dot_dimension_numbers<[1], [0], [0], [1], [0, 0, 1, 1], [], []>} : vector<8x32xf32>, vector<32x256xf32>, vector<8x256xf32> -> vector<8x256xf32>
    %31 = vector.broadcast %29 : vector<8x1xf32> to vector<8x256xf32>
    %32 = arith.addf %30, %31 : vector<8x256xf32>
    %c0_29 = arith.constant 0 : index
    %c0_30 = arith.constant 0 : index
    %33 = vector.load %arg12[%c0_29, %c0_30] : memref<8x256xf32, #tpu.memory_space<vmem>>, vector<8x256xf32>
    tpu.vector_store %arg12[%c0_29, %c0_30], %32 {strides = array<i32>} : memref<8x256xf32, #tpu.memory_space<vmem>>, vector<8x256xf32>,
    return
  }
  func.func @transform_0(%arg0: i32) -> (i32, i32) {
    %c0_i32 = arith.constant 0 : i32
    %c0_i32_0 = arith.constant 0 : i32
    return %c0_i32, %arg0 : i32, i32
  }
  func.func @transform_1(%arg0: i32) -> (i32, i32) {
    %c0_i32 = arith.constant 0 : i32
    %c0_i32_0 = arith.constant 0 : i32
    %c0_i32_1 = arith.constant 0 : i32
    return %c0_i32, %c0_i32_0 : i32, i32
  }
  func.func @transform_2(%arg0: i32) -> (i32, i32) {
    %c0_i32 = arith.constant 0 : i32
    %c0_i32_0 = arith.constant 0 : i32
    %c0_i32_1 = arith.constant 0 : i32
    return %c0_i32, %c0_i32_0 : i32, i32
  }
  func.func @transform_3(%arg0: i32) -> (i32, i32) {
    %c0_i32 = arith.constant 0 : i32
    %c0_i32_0 = arith.constant 0 : i32
    %c0_i32_1 = arith.constant 0 : i32
    return %c0_i32, %c0_i32_0 : i32, i32
  }
  func.func @transform_4(%arg0: i32) -> (i32, i32) {
    %c0_i32 = arith.constant 0 : i32
    %c0_i32_0 = arith.constant 0 : i32
    %c0_i32_1 = arith.constant 0 : i32
    return %c0_i32, %c0_i32_0 : i32, i32
  }
  func.func @transform_5(%arg0: i32) -> (i32, i32) {
    %c0_i32 = arith.constant 0 : i32
    %c0_i32_0 = arith.constant 0 : i32
    %c0_i32_1 = arith.constant 0 : i32
    return %c0_i32, %c0_i32_0 : i32, i32
  }
  func.func @transform_6(%arg0: i32) -> (i32, i32) {
    %c0_i32 = arith.constant 0 : i32
    %c0_i32_0 = arith.constant 0 : i32
    %c0_i32_1 = arith.constant 0 : i32
    return %c0_i32, %c0_i32_0 : i32, i32
  }
  func.func @transform_7(%arg0: i32) -> (i32, i32) {
    %c0_i32 = arith.constant 0 : i32
    %c0_i32_0 = arith.constant 0 : i32
    %c0_i32_1 = arith.constant 0 : i32
    return %c0_i32, %c0_i32_0 : i32, i32
  }
  func.func @transform_8(%arg0: i32) -> (i32, i32) {
    %c0_i32 = arith.constant 0 : i32
    %c0_i32_0 = arith.constant 0 : i32
    %c0_i32_1 = arith.constant 0 : i32
    return %c0_i32, %c0_i32_0 : i32, i32
  }
  func.func @transform_9(%arg0: i32) -> (i32, i32) {
    %c0_i32 = arith.constant 0 : i32
    %c0_i32_0 = arith.constant 0 : i32
    %c0_i32_1 = arith.constant 0 : i32
    return %c0_i32, %c0_i32_0 : i32, i32
  }
  func.func @transform_10(%arg0: i32) -> (i32, i32) {
    %c0_i32 = arith.constant 0 : i32
    %c0_i32_0 = arith.constant 0 : i32
    %c0_i32_1 = arith.constant 0 : i32
    return %c0_i32, %c0_i32_0 : i32, i32
  }
  func.func @transform_11(%arg0: i32) -> (i32, i32) {
    %c0_i32 = arith.constant 0 : i32
    %c0_i32_0 = arith.constant 0 : i32
    return %c0_i32, %arg0 : i32, i32
  }
}

</mosaic_0001>

<bundles_post_ra>
// kernel: tpu_custom_call.1
= control target key start
LH: loop header
LB: loop body
LE: loop exit
PB: predicated region body
PF: predicated region fallthrough
CT: control target
= control target key end

     0   :  { %v847_v4 = vmov 0.0   ;;  %vm55_vm0 = vcmask 130048   ;;  %s1069_s0 = inlined_call_operand.vmem [shape: f32[16,256], index: 0, kind: input, shape index: {}]   ;;  %s1070_s1 = inlined_call_operand.vmem [shape: f32[32,16], index: 1, kind: input, shape index: {}]   ;;  %s1071_s2 = inlined_call_operand.vmem [shape: f32[32,16], index: 2, kind: input, shape index: {}]   ;;  %s1072_s3 = inlined_call_operand.vmem [shape: f32[32,1], index: 3, kind: input, shape index: {}]   ;;  %s1073_s4 = inlined_call_operand.vmem [shape: f32[32,32], index: 4, kind: input, shape index: {}]   ;;  %s1074_s5 = inlined_call_operand.vmem [shape: f32[32,32], index: 5, kind: input, shape index: {}]   ;;  %s1075_s6 = inlined_call_operand.vmem [shape: f32[32,1], index: 6, kind: input, shape index: {}]   ;;  %s1076_s7 = inlined_call_operand.vmem [shape: f32[32,32], index: 7, kind: input, shape index: {}]   ;;  %s1077_s8 = inlined_call_operand.vmem [shape: f32[32,1], index: 8, kind: input, shape index: {}]   ;;  %s1078_s9 = inlined_call_operand.vmem [shape: f32[8,32], index: 9, kind: input, shape index: {}]   ;;  %s1079_s10 = inlined_call_operand.vmem [shape: f32[8,1], index: 10, kind: input, shape index: {}]   ;;  %s1080_s11 = inlined_call_operand.hbm [shape: f32[8,256], index: 11, kind: output, shape index: {}]  }
   0x1   :  { %v42_v0 = vld [vmem:[%s1069_s0 + $0x18] sm:$0xff]  ;;  %v41_v1 = vld [vmem:[%s1069_s0 + $0x10] sm:$0xff]  ;;  %v40_v2 = vld [vmem:[%s1069_s0 + $0x8] sm:$0xff]  ;;  %144 = vmatprep.mubr.f32.mxu1 %v847_v4  ;;  %132 = vmatprep.mubr.f32.mxu0 %v847_v4 }
   0x2   :  { %816 = vmatprep.subr.mxu1 %v42_v0  ;;  %v39_v3 = vld [vmem:[%s1069_s0] sm:$0xff]  ;;  %v45_v5 = vld [vmem:[%s1070_s1 + $0x10] sm:$0xff]  ;;  %96 = vmatprep.subr.mxu0 %v42_v0  ;;  %v46_v6 = vld [vmem:[%s1070_s1 + $0x18] sm:$0xff] }
   0x3   :  { %818 = vmatpush1.msra.mxu1 %v41_v1  ;;  %97 = vmatpush1.msra.mxu0 %v41_v1  ;;  %v43_v7 = vld [vmem:[%s1070_s1] sm:$0xff] }
   0x4   :  { %817 = vmatprep.subr.mxu1 %v40_v2  ;;  %98 = vmatprep.subr.mxu0 %v40_v2 }
   0x5   :  { %819 = vmatpush1.msra.mxu1 %v39_v3  ;;  %99 = vmatpush1.msra.mxu0 %v39_v3 }
   0x6   :  { %797 = vmatmul.mubr.msk.f32.vlgmr.msra.gmra.mxu1 %vm55_vm0, %v45_v5  ;;  %197 = vmatprep.subr.mxu1 %v42_v0 }
   0x7   :  { %150 = vmatprep.mubr.f32.mxu1 %v847_v4  ;;  %198 = vmatpush1.msra.mxu1 %v41_v1 }
   0x8   :  { %199 = vmatprep.subr.mxu1 %v40_v2 }
   0x9   :  { %200 = vmatpush1.msra.mxu1 %v39_v3 }
   0xa   :  { %16 = vsyncpa [#allocation3], 0  ;;  %798 = vmatmul.mubr.msk.f32.gmra.mxu1 %vm55_vm0, %v46_v6  ;;  %795 = vmatmul.mubr.msk.f32.vlgmr.msra.gmra.mxu0 %vm55_vm0, %v43_v7  ;;  %v54_v8 = vld [vmem:[%s1072_s3 + $0x18] sm:$0xff]  ;;  %v52_v9 = vld [vmem:[%s1072_s3 + $0x8] sm:$0xff]  ;;  %v848_v12 = vmov 0   ;;  %vm314_vm1 = vcmask 261120  }
   0xb   :  { %233 = vmatprep.mubr.f32.mxu1 %v847_v4  ;;  %v47_v10 = vld [vmem:[%s1071_s2] sm:$0xff]  ;;  %138 = vmatprep.mubr.f32.mxu0 %v847_v4  ;;  %v44_v11 = vld [vmem:[%s1070_s1 + $0x8] sm:$0xff]  ;;  %v53_v13 = vld [vmem:[%s1072_s3 + $0x10] sm:$0xff]  ;;  %s849_s20 = smov [#allocation2]  }
   0xc   :  { %823 = vset.pattern.permute.xlu0 %v848_v12  ;;  %824 = vset.pattern.permute.xlu1 %v848_v12  ;;  %v51_v14 = vld [vmem:[%s1072_s3] sm:$0xff]  ;;  %v48_v15 = vld [vmem:[%s1071_s2 + $0x8] sm:$0xff]  ;;  %v313_v16 = vld [vmem:[%s1075_s6 + $0x18] sm:$0xff]  ;;  %s787_s21 = sshll.u32 %s849_s20, 4  ;;  %s788_s21 = int_to_ptr.vmem [resolvable:$true] %s787_s21 }
   0xd   :  { %283 = vperm.xlu0 %823, %v54_v8   ;;  %273 = vperm.xlu1 %824, %v52_v9   ;;  %v312_v17 = vld [vmem:[%s1075_s6 + $0x10] sm:$0xff]  ;;  %v311_v19 = vld [vmem:[%s1075_s6 + $0x8] sm:$0xff]  ;;  %v310_v20 = vld [vmem:[%s1075_s6] sm:$0xff]  ;;  %s825_s22 = scalar_lea.vmem %s788_s21, 256  ;;  %p830_p1 = scmp.lt.s32.totalorder %s788_s21, %s788_s21 }
   0xe   :  { %799 = vmatmul.mubr.msk.f32.vlgmr.msra.gmra.mxu1 %vm55_vm0, %v47_v10  ;;  %796 = vmatmul.mubr.msk.f32.gmra.mxu0 %vm55_vm0, %v44_v11  ;;  %v49_v18 = vld [vmem:[%s1071_s2 + $0x10] sm:$0xff]  ;;  %v50_v21 = vld [vmem:[%s1071_s2 + $0x18] sm:$0xff]  ;;  %v566_v24 = vld [vmem:[%s1077_s8 + $0x8] sm:$0xff]  ;;  %p826_p0 = scmp.ne.s32.totalorder %s788_s21, %s825_s22  ;;  %p831_p2 = scmp.lt.s32.totalorder %s825_s22, %s825_s22 }
   0xf   :  { %239 = vmatprep.mubr.f32.mxu1 %v847_v4  ;;  %391 = vmatprep.mubr.f32.mxu0 %v847_v4  ;;  %v568_v22 = vld [vmem:[%s1077_s8 + $0x18] sm:$0xff]  ;;  %v567_v23 = vld [vmem:[%s1077_s8 + $0x10] sm:$0xff]  ;;  %v565_v25 = vld [vmem:[%s1077_s8] sm:$0xff] }
  0x10   :  { %v699_v26 = vld [vmem:[%s1079_s10] sm:$0xff]  ;;  %v303_v10 = vld [vmem:[%s1073_s4 + $0x8] sm:$0xff]  ;;  %v304_v12 = vld [vmem:[%s1073_s4 + $0x10] sm:$0xff]  ;;  %p832_p3 = por %p831_p2, %p830_p1 }
  0x11   :  { %278 = vperm.xlu0 %823, %v53_v13   ;;  %268 = vperm.xlu1 %824, %v51_v14   ;;  %v302_v8 = vld [vmem:[%s1073_s4] sm:$0xff]  ;;  %v307_v11 = vld [vmem:[%s1074_s5 + $0x8] sm:$0xff]  ;;  %v308_v13 = vld [vmem:[%s1074_s5 + $0x10] sm:$0xff] }
  0x12   :  { %800 = vmatmul.mubr.msk.f32.gmra.mxu1 %vm55_vm0, %v48_v15  ;;  %v306_v9 = vld [vmem:[%s1074_s5] sm:$0xff]  ;;  %v305_v14 = vld [vmem:[%s1073_s4 + $0x18] sm:$0xff]  ;;  %p833_p4 = pnand %p832_p3, %p826_p0 }
  0x13   :  { %245 = vmatprep.mubr.f32.mxu1 %v847_v4  ;;  %v309_v15 = vld [vmem:[%s1074_s5 + $0x18] sm:$0xff] }
  0x15   :  { %542 = vperm.xlu0 %823, %v313_v16   ;;  %537 = vperm.xlu1 %824, %v312_v17  }
  0x16   :  { %801 = vmatmul.mubr.msk.f32.gmra.mxu1 %vm55_vm0, %v49_v18 }
  0x17   :  { %251 = vmatprep.mubr.f32.mxu1 %v847_v4 }
  0x19   :  { %532 = vperm.xlu0 %823, %v311_v19   ;;  %527 = vperm.xlu1 %824, %v310_v20  }
  0x1a   :  { %802 = vmatmul.mubr.msk.f32.gmra.mxu1 %vm55_vm0, %v50_v21 }
  0x1b   :  { %492 = vmatprep.mubr.f32.mxu1 %v847_v4 }
  0x1d   :  { %586 = vperm.xlu0 %823, %v568_v22   ;;  %581 = vperm.xlu1 %824, %v567_v23  }
  0x21   :  { %576 = vperm.xlu0 %823, %v566_v24   ;;  %571 = vperm.xlu1 %824, %v565_v25  }
  0x25   :  { %702 = vperm.xlu0 %823, %v699_v26  }
  0x88   :  { %v284_v39 = vpop.permute.xlu0 %283  ;;  %v274_v43 = vpop.permute.xlu1 %273 }
  0x8c   :  { %v279_v50 = vpop.permute.xlu0 %278  ;;  %v269_v58 = vpop.permute.xlu1 %268 }
  0xc6   :  { %v146_v27 = vpop.f32.mrf.mxu1 }
  0xc8   :  { %v148_v28 = vpop.f32.mrf.mxu1 }
  0xca   :  { %v152_v29 = vpop.f32.mrf.mxu1  ;;  %v134_v31 = vpop.f32.mrf.mxu0 }
  0xcc   :  { %v154_v30 = vpop.f32.mrf.mxu1  ;;  %v136_v34 = vpop.f32.mrf.mxu0 }
  0xce   :  { %v235_v32 = vpop.f32.mrf.mxu1  ;;  %v140_v37 = vpop.f32.mrf.mxu0 }
  0xcf   :  { %v258_v56 = vmax.f32 %v134_v31, %v235_v32  ;;  %v538_v31 = vpop.permute.xlu1 %537 }
  0xd0   :  { %v237_v33 = vpop.f32.mrf.mxu1  ;;  %v142_v41 = vpop.f32.mrf.mxu0 }
  0xd1   :  { %v259_v53 = vmax.f32 %v136_v34, %v237_v33  ;;  %v286_v1 = vadd.f32 %v269_v58, %v258_v56 }
  0xd2   :  { %v241_v35 = vpop.f32.mrf.mxu1 }
  0xd3   :  { %v260_v51 = vmax.f32 %v140_v37, %v241_v35  ;;  %v287_v63 = vadd.f32 %v269_v58, %v259_v53  ;;  %v294_v7 = vmax.f32 %v286_v1, 0.0 }
  0xd4   :  { %v243_v36 = vpop.f32.mrf.mxu1 }
  0xd5   :  { %v261_v48 = vmax.f32 %v142_v41, %v243_v36  ;;  %v288_v61 = vadd.f32 %v274_v43, %v260_v51  ;;  %v295_v6 = vmax.f32 %v287_v63, 0.0  ;;  %v564_v63 = vld [vmem:[%s1076_s7 + $0x18] sm:$0xff] }
  0xd6   :  { %v247_v38 = vpop.f32.mrf.mxu1 }
  0xd7   :  { %v262_v46 = vmax.f32 %v146_v27, %v247_v38  ;;  %v289_v59 = vadd.f32 %v274_v43, %v261_v48  ;;  %v296_v5 = vmax.f32 %v288_v61, 0.0  ;;  %v562_v61 = vld [vmem:[%s1076_s7 + $0x8] sm:$0xff] }
  0xd8   :  { %v249_v40 = vpop.f32.mrf.mxu1 }
  0xd9   :  { %v263_v44 = vmax.f32 %v148_v28, %v249_v40  ;;  %v290_v57 = vadd.f32 %v279_v50, %v262_v46  ;;  %v297_v3 = vmax.f32 %v289_v59, 0.0  ;;  %v543_v28 = vpop.permute.xlu0 %542 }
  0xda   :  { %v253_v42 = vpop.f32.mrf.mxu1 }
  0xdb   :  { %v264_v45 = vmax.f32 %v152_v29, %v253_v42  ;;  %v291_v54 = vadd.f32 %v279_v50, %v263_v44  ;;  %v298_v2 = vmax.f32 %v290_v57, 0.0 }
  0xdc   :  { %v255_v47 = vpop.f32.mrf.mxu1 }
  0xdd   :  { %v265_v49 = vmax.f32 %v154_v30, %v255_v47  ;;  %v292_v52 = vadd.f32 %v284_v39, %v264_v45  ;;  %v299_v0 = vmax.f32 %v291_v54, 0.0  ;;  %v533_v44 = vpop.permute.xlu0 %532 }
  0xdf   :  { %v293_v55 = vadd.f32 %v284_v39, %v265_v49  ;;  %v300_v62 = vmax.f32 %v292_v52, 0.0  ;;  %v528_v49 = vpop.permute.xlu1 %527 }
  0xe1   :  { %v301_v60 = vmax.f32 %v293_v55, 0.0 }
  0xe3   :  { %351 = vmatprep.subr.mxu0 %v301_v60  ;;  %452 = vmatprep.subr.mxu1 %v301_v60  ;;  %v561_v60 = vld [vmem:[%s1076_s7] sm:$0xff] }
  0xe4   :  { %352 = vmatpush1.msra.mxu0 %v300_v62  ;;  %453 = vmatpush1.msra.mxu1 %v300_v62  ;;  %v563_v62 = vld [vmem:[%s1076_s7 + $0x10] sm:$0xff] }
  0xe5   :  { %353 = vmatprep.subr.mxu0 %v299_v0  ;;  %454 = vmatprep.subr.mxu1 %v299_v0 }
  0xe6   :  { %354 = vmatpush1.msra.mxu0 %v298_v2  ;;  %455 = vmatpush1.msra.mxu1 %v298_v2 }
  0xe7   :  { %355 = vmatprep.subr.mxu0 %v297_v3  ;;  %456 = vmatprep.subr.mxu1 %v297_v3 }
  0xe8   :  { %356 = vmatpush1.msra.mxu0 %v296_v5  ;;  %457 = vmatpush1.msra.mxu1 %v296_v5 }
  0xe9   :  { %357 = vmatprep.subr.mxu0 %v295_v6  ;;  %458 = vmatprep.subr.mxu1 %v295_v6  ;;  %v587_v6 = vpop.permute.xlu0 %586 }
  0xea   :  { %358 = vmatpush1.msra.mxu0 %v294_v7  ;;  %459 = vmatpush1.msra.mxu1 %v294_v7 }
  0xeb   :  { %803 = vmatmul.mubr.msk.f32.vlgmr.msra.gmra.mxu0 %vm314_vm1, %v302_v8  ;;  %807 = vmatmul.mubr.msk.f32.vlgmr.msra.gmra.mxu1 %vm314_vm1, %v306_v9  ;;  %v582_v8 = vpop.permute.xlu1 %581 }
  0xec   :  { %397 = vmatprep.mubr.f32.mxu0 %v847_v4  ;;  %498 = vmatprep.mubr.f32.mxu1 %v847_v4 }
  0xef   :  { %804 = vmatmul.mubr.msk.f32.gmra.mxu0 %vm314_vm1, %v303_v10  ;;  %808 = vmatmul.mubr.msk.f32.gmra.mxu1 %vm314_vm1, %v307_v11 }
  0xf0   :  { %403 = vmatprep.mubr.f32.mxu0 %v847_v4  ;;  %504 = vmatprep.mubr.f32.mxu1 %v847_v4 }
  0xf3   :  { %805 = vmatmul.mubr.msk.f32.gmra.mxu0 %vm314_vm1, %v304_v12  ;;  %809 = vmatmul.mubr.msk.f32.gmra.mxu1 %vm314_vm1, %v308_v13 }
  0xf4   :  { %409 = vmatprep.mubr.f32.mxu0 %v847_v4  ;;  %510 = vmatprep.mubr.f32.mxu1 %v847_v4 }
  0xf7   :  { %806 = vmatmul.mubr.msk.f32.gmra.mxu0 %vm314_vm1, %v305_v14  ;;  %810 = vmatmul.mubr.msk.f32.gmra.mxu1 %vm314_vm1, %v309_v15 }
  0xf8   :  { %665 = vmatprep.mubr.f32.mxu0 %v847_v4  ;;  %772 = vmatprep.mubr.f32.mxu1 %v847_v4 }
 0x1ab   :  { %v393_v16 = vpop.f32.mrf.mxu0  ;;  %v494_v17 = vpop.f32.mrf.mxu1 }
 0x1ac   :  { %v517_v45 = vmax.f32 %v393_v16, %v494_v17  ;;  %v572_v17 = vpop.permute.xlu1 %571 }
 0x1ad   :  { %v395_v18 = vpop.f32.mrf.mxu0  ;;  %v496_v19 = vpop.f32.mrf.mxu1 }
 0x1ae   :  { %v518_v41 = vmax.f32 %v395_v18, %v496_v19  ;;  %v545_v54 = vadd.f32 %v528_v49, %v517_v45 }
 0x1af   :  { %v399_v20 = vpop.f32.mrf.mxu0  ;;  %v500_v21 = vpop.f32.mrf.mxu1 }
 0x1b0   :  { %v519_v39 = vmax.f32 %v399_v20, %v500_v21  ;;  %v546_v52 = vadd.f32 %v528_v49, %v518_v41  ;;  %v553_v59 = vmax.f32 %v545_v54, 0.0 }
 0x1b1   :  { %v401_v22 = vpop.f32.mrf.mxu0  ;;  %v502_v23 = vpop.f32.mrf.mxu1 }
 0x1b2   :  { %v520_v37 = vmax.f32 %v401_v22, %v502_v23  ;;  %v547_v50 = vadd.f32 %v533_v44, %v519_v39  ;;  %v554_v58 = vmax.f32 %v546_v52, 0.0 }
 0x1b3   :  { %v405_v24 = vpop.f32.mrf.mxu0  ;;  %v506_v25 = vpop.f32.mrf.mxu1 }
 0x1b4   :  { %v521_v34 = vmax.f32 %v405_v24, %v506_v25  ;;  %v548_v47 = vadd.f32 %v533_v44, %v520_v37  ;;  %v555_v57 = vmax.f32 %v547_v50, 0.0 }
 0x1b5   :  { %v407_v26 = vpop.f32.mrf.mxu0  ;;  %v508_v27 = vpop.f32.mrf.mxu1 }
 0x1b6   :  { %v522_v32 = vmax.f32 %v407_v26, %v508_v27  ;;  %v549_v46 = vadd.f32 %v538_v31, %v521_v34  ;;  %v556_v56 = vmax.f32 %v548_v47, 0.0 }
 0x1b7   :  { %v411_v29 = vpop.f32.mrf.mxu0  ;;  %v512_v30 = vpop.f32.mrf.mxu1 }
 0x1b8   :  { %v523_v33 = vmax.f32 %v411_v29, %v512_v30  ;;  %v550_v42 = vadd.f32 %v538_v31, %v522_v32  ;;  %v557_v55 = vmax.f32 %v549_v46, 0.0 }
 0x1b9   :  { %v413_v35 = vpop.f32.mrf.mxu0  ;;  %v514_v36 = vpop.f32.mrf.mxu1 }
 0x1ba   :  { %v524_v38 = vmax.f32 %v413_v35, %v514_v36  ;;  %v551_v40 = vadd.f32 %v543_v28, %v523_v33  ;;  %v558_v53 = vmax.f32 %v550_v42, 0.0 }
 0x1bc   :  { %v552_v43 = vadd.f32 %v543_v28, %v524_v38  ;;  %v559_v51 = vmax.f32 %v551_v40, 0.0  ;;  %v698_v28 = vld [vmem:[%s1078_s9] sm:$0xff] }
 0x1be   :  { %v560_v48 = vmax.f32 %v552_v43, 0.0 }
 0x1c0   :  { %625 = vmatprep.subr.mxu0 %v560_v48 }
 0x1c1   :  { %626 = vmatpush1.msra.mxu0 %v559_v51 }
 0x1c2   :  { %627 = vmatprep.subr.mxu0 %v558_v53 }
 0x1c3   :  { %628 = vmatpush1.msra.mxu0 %v557_v55 }
 0x1c4   :  { %629 = vmatprep.subr.mxu0 %v556_v56 }
 0x1c5   :  { %630 = vmatpush1.msra.mxu0 %v555_v57 }
 0x1c6   :  { %631 = vmatprep.subr.mxu0 %v554_v58 }
 0x1c7   :  { %632 = vmatpush1.msra.mxu0 %v553_v59 }
 0x1c8   :  { %811 = vmatmul.mubr.msk.f32.vlgmr.msra.gmra.mxu0 %vm314_vm1, %v561_v60 }
 0x1c9   :  { %671 = vmatprep.mubr.f32.mxu0 %v847_v4 }
 0x1cc   :  { %812 = vmatmul.mubr.msk.f32.gmra.mxu0 %vm314_vm1, %v562_v61 }
 0x1cd   :  { %677 = vmatprep.mubr.f32.mxu0 %v847_v4 }
 0x1d0   :  { %813 = vmatmul.mubr.msk.f32.gmra.mxu0 %vm314_vm1, %v563_v62 }
 0x1d1   :  { %683 = vmatprep.mubr.f32.mxu0 %v847_v4  ;;  %v577_v4 = vpop.permute.xlu0 %576 }
 0x1d4   :  { %814 = vmatmul.mubr.msk.f32.gmra.mxu0 %vm314_vm1, %v564_v63 }
 0x1d5   :  { %v703_v29 = vpop.permute.xlu0 %702 }
 0x288   :  { %v667_v0 = vpop.f32.mrf.mxu0 }
 0x289   :  { %v668_v22 = vadd.f32 %v667_v0, %v572_v17 }
 0x28a   :  { %v669_v1 = vpop.f32.mrf.mxu0 }
 0x28b   :  { %v670_v20 = vadd.f32 %v669_v1, %v572_v17  ;;  %v690_v27 = vmax.f32 %v668_v22, 0.0 }
 0x28c   :  { %v673_v2 = vpop.f32.mrf.mxu0 }
 0x28d   :  { %v674_v18 = vadd.f32 %v673_v2, %v577_v4  ;;  %v691_v26 = vmax.f32 %v670_v20, 0.0 }
 0x28e   :  { %v675_v3 = vpop.f32.mrf.mxu0 }
 0x28f   :  { %v676_v15 = vadd.f32 %v675_v3, %v577_v4  ;;  %v692_v25 = vmax.f32 %v674_v18, 0.0 }
 0x290   :  { %v679_v5 = vpop.f32.mrf.mxu0 }
 0x291   :  { %v680_v14 = vadd.f32 %v679_v5, %v582_v8  ;;  %v693_v24 = vmax.f32 %v676_v15, 0.0 }
 0x292   :  { %v681_v7 = vpop.f32.mrf.mxu0 }
 0x293   :  { %v682_v12 = vadd.f32 %v681_v7, %v582_v8  ;;  %v694_v23 = vmax.f32 %v680_v14, 0.0 }
 0x294   :  { %v685_v9 = vpop.f32.mrf.mxu0 }
 0x295   :  { %v686_v10 = vadd.f32 %v685_v9, %v587_v6  ;;  %v695_v21 = vmax.f32 %v682_v12, 0.0 }
 0x296   :  { %v687_v11 = vpop.f32.mrf.mxu0 }
 0x297   :  { %v688_v13 = vadd.f32 %v687_v11, %v587_v6  ;;  %v696_v19 = vmax.f32 %v686_v10, 0.0 }
 0x299   :  { %v697_v16 = vmax.f32 %v688_v13, 0.0 }
 0x29b   :  { %732 = vmatprep.subr.mxu1 %v697_v16 }
 0x29c   :  { %733 = vmatpush1.msra.mxu1 %v696_v19 }
 0x29d   :  { %734 = vmatprep.subr.mxu1 %v695_v21 }
 0x29e   :  { %735 = vmatpush1.msra.mxu1 %v694_v23 }
 0x29f   :  { %736 = vmatprep.subr.mxu1 %v693_v24 }
 0x2a0   :  { %737 = vmatpush1.msra.mxu1 %v692_v25 }
 0x2a1   :  { %738 = vmatprep.subr.mxu1 %v691_v26 }
 0x2a2   :  { %739 = vmatpush1.msra.mxu1 %v690_v27 }
 0x2a3   :  { %815 = vmatmul.mubr.msk.f32.vlgmr.msra.gmra.mxu1 %vm314_vm1, %v698_v28 }
 0x363   :  { %v774_v30 = vpop.f32.mrf.mxu1 }
 0x364   :  { %v775_v31 = vadd.f32 %v774_v30, %v703_v29 }
 0x365   :  { %v776_v32 = vpop.f32.mrf.mxu1 }
 0x366   :  { %779 = vst [vmem:[#allocation2] sm:$0xff] %v775_v31  ;;  %v777_v33 = vadd.f32 %v776_v32, %v703_v29 }
 0x368   :  { %780 = vst [vmem:[#allocation2 + $0x8] sm:$0xff] %v777_v33 }
 0x369   :  { %836 = shalt.err (!%p833_p4)
}
 0x36a   :  { %790 = dma.vmem_to_hbm [thread:$0]  %s788_s21, 256, %s1080_s11, [#allocation3]  }
 0x36b   :  { %845 = dma.done.wait [#allocation3], 256  }
 0x36c   :  { %846 = vsyncadd [#allocation3], 4294967040 }
 0x36d   :  { %794 = vsyncpa [#allocation3], 1 }

</bundles_post_ra>
